<compile_context>
chip_gen: v7x
topology: tpu7x:2x2x1
jax: 0.10.0
libtpu: 0.0.40
codegen_flags: <defaults>
</compile_context>

<pallas_src>
import functools

import jax
import jax.numpy as jnp
from jax.experimental import pallas as pl
from jax.experimental.pallas import tpu as pltpu

LANE = 128
_MIN_SPLIT_ROWS = 64  # batches > 2*this always get >= 2 tiles (v7x megacore)


def _round_up(x, m):
    return ((x + m - 1) // m) * m


def _cdiv(a, b):
    return -(-a // b)


def _elementwise_dtype():
    """bf16 elementwise on v6e/v7x (native bf16 VPU); f32 on v5e and older."""
    try:
        kind = jax.devices()[0].device_kind.lower()
    except Exception:
        return jnp.float32
    if any(tag in kind for tag in ("v6", "v7", "7x")):
        return jnp.bfloat16
    return jnp.float32


def mlp_kernel(x_ref,
               w1_ref, b1_ref,
               w2_ref, b2_ref,
               w3_ref, b3_ref,
               w4_ref, b4_ref,
               out_ref, *, ew_dtype):
    """4-layer MLP tile: bf16 MXU inputs, f32 accumulation, ew_dtype bias+ReLU."""

    def layer(h, w_ref, b_ref, relu):
        acc = jnp.dot(h, w_ref[...], preferred_element_type=jnp.float32)
        acc = acc.astype(ew_dtype) + b_ref[...]
        if relu:
            acc = jnp.maximum(acc, 0)
        return acc.astype(jnp.bfloat16)

    h = layer(x_ref[...], w1_ref, b1_ref, relu=True)
    h = layer(h, w2_ref, b2_ref, relu=True)
    h = layer(h, w3_ref, b3_ref, relu=True)
    y = layer(h, w4_ref, b4_ref, relu=False)
    out_ref[...] = y.astype(out_ref.dtype)


def regression_model_forward(x, kparams, output_dim, *, block_batch=1024):
    """x: (batch, input_dim) f32. kparams: padded/bf16 weights (prepare_kernel_params)."""
    batch, in_dim = x.shape
    out_pad = kparams["w4"].shape[1]          # lane-padded output width (mult of 128)
    ew_dtype = kparams["b1"].dtype            # elementwise dtype chosen at prep time

    # ---- batch tiling: big tiles, >=2 tiles for mid-size batches, tiny pad ----
    n_tiles = max(1, _cdiv(batch, block_batch))
    if n_tiles == 1 and batch > 2 * _MIN_SPLIT_ROWS:
        n_tiles = 2                           # keep both v7x TensorCores busy
    tb = max(8, _round_up(_cdiv(batch, n_tiles), 8))
    padded_batch = _round_up(batch, tb)
    n_tiles = padded_batch // tb

    # x streamed as bf16; pad only the (small) batch remainder, if any.
    x = x.astype(jnp.bfloat16)
    if padded_batch != batch:
        x = jnp.pad(x, ((0, padded_batch - batch), (0, 0)))

    weight_args = (kparams["w1"], kparams["b1"],
                   kparams["w2"], kparams["b2"],
                   kparams["w3"], kparams["b3"],
                   kparams["w4"], kparams["b4"])

    # Weights/biases: constant index_map -> loaded once, VMEM-resident across tiles.
    def const_spec(shape):
        return pl.BlockSpec(shape, lambda i: (0, 0))

    flops = 2 * padded_batch * sum(
        kparams[f"w{k}"].shape[0] * kparams[f"w{k}"].shape[1] for k in (1, 2, 3, 4))
    weight_bytes = sum(int(a.size) * a.dtype.itemsize for a in weight_args)
    stream_bytes = padded_batch * (in_dim * 2 + out_pad * 2)   # bf16 x in, bf16 out
    bytes_accessed = weight_bytes + stream_bytes

    # Explicit VMEM budget: double-buffered weights + x/out tiles + generous
    # headroom for the (tb, 512) intermediates (matters on v7x's 64 MiB part).
    vmem_limit = (2 * weight_bytes
                  + 2 * tb * (in_dim + out_pad) * 2
                  + 8 * tb * 512 * 4
                  + (4 << 20))
    vmem_limit = int(min(max(vmem_limit, 16 << 20), 64 << 20))

    y = pl.pallas_call(
        functools.partial(mlp_kernel, ew_dtype=ew_dtype),
        out_shape=jax.ShapeDtypeStruct((padded_batch, out_pad), jnp.bfloat16),
        grid=(n_tiles,),
        in_specs=[
            pl.BlockSpec((tb, in_dim), lambda i: (i, 0)),   # x: tiled over batch
            *[const_spec(a.shape) for a in weight_args],    # weights: resident
        ],
        out_specs=pl.BlockSpec((tb, out_pad), lambda i: (i, 0)),
        compiler_params=pltpu.CompilerParams(
            dimension_semantics=("parallel",),
            vmem_limit_bytes=vmem_limit),
        cost_estimate=pl.CostEstimate(
            flops=flops, transcendentals=0, bytes_accessed=bytes_accessed),
    )(x, *weight_args)

    # strip batch padding + lane padding; restore the module's f32 output dtype
    return y[:batch, :output_dim].astype(jnp.float32)


def init_params(key, input_dim, output_dim):
    """f32 reference params; weights stored transposed vs nn.Linear: (in, out)."""
    dims = [(input_dim, 512), (512, 512), (512, 64), (64, output_dim)]
    params = {}
    for i, (din, dout) in enumerate(dims, start=1):
        key, kw, kb = jax.random.split(key, 3)
        bound = 1.0 / jnp.sqrt(jnp.float32(din))
        params[f"w{i}"] = jax.random.uniform(
            kw, (din, dout), jnp.float32, minval=-bound, maxval=bound)
        params[f"b{i}"] = jax.random.uniform(
            kb, (1, dout), jnp.float32, minval=-bound, maxval=bound)
    return params


def prepare_kernel_params(params, output_dim, ew_dtype=jnp.float32):
    """Zero-pad narrow dims (64-wide hidden, out_dim) to 128 lanes; weights bf16;
    biases in the elementwise dtype (bf16 on v6e/v7x, f32 on v5e)."""
    h3_pad = _round_up(params["w3"].shape[1], LANE)   # 64  -> 128
    out_pad = _round_up(output_dim, LANE)             # 8   -> 128

    w3 = jnp.pad(params["w3"], ((0, 0), (0, h3_pad - params["w3"].shape[1])))
    b3 = jnp.pad(params["b3"], ((0, 0), (0, h3_pad - params["b3"].shape[1])))
    w4 = jnp.pad(params["w4"], ((0, h3_pad - params["w4"].shape[0]),
                                (0, out_pad - params["w4"].shape[1])))
    b4 = jnp.pad(params["b4"], ((0, 0), (0, out_pad - params["b4"].shape[1])))

    return {
        "w1": params["w1"].astype(jnp.bfloat16), "b1": params["b1"].astype(ew_dtype),
        "w2": params["w2"].astype(jnp.bfloat16), "b2": params["b2"].astype(ew_dtype),
        "w3": w3.astype(jnp.bfloat16),           "b3": b3.astype(ew_dtype),
        "w4": w4.astype(jnp.bfloat16),           "b4": b4.astype(ew_dtype),
    }


if __name__ == "__main__":
    key = jax.random.PRNGKey(0)
    kx, kp = jax.random.split(key)

    batch = 8
    input_dim = 32
    output_dim = 8

    x = jax.random.normal(kx, (batch, input_dim), jnp.float32)
    params = init_params(kp, input_dim, output_dim)
    kparams = prepare_kernel_params(params, output_dim, ew_dtype=_elementwise_dtype())

    y = regression_model_forward(x, kparams, output_dim)
    jax.block_until_ready(y)

    # sanity: f32 reference in plain JAX (bf16 path in the kernel -> loose tol)
    def ref(x, p):
        h = jnp.maximum(x @ p["w1"] + p["b1"], 0.0)
        h = jnp.maximum(h @ p["w2"] + p["b2"], 0.0)
        h = jnp.maximum(h @ p["w3"] + p["b3"], 0.0)
        return h @ p["w4"] + p["b4"]

    y_ref = ref(x, params)
    assert y.shape == (batch, output_dim)
    assert jnp.allclose(y, y_ref, atol=1e-1, rtol=1e-1), \
        float(jnp.max(jnp.abs(y - y_ref)))

    print("KERNEL_OK")
</pallas_src>

<mosaic_0001>
module attributes {stable_mosaic.version = 11 : i64} {
  func.func @mlp_kernel(%arg0: i32, %arg1: memref<8x32xbf16, #tpu.memory_space<vmem>>, %arg2: memref<32x512xbf16, #tpu.memory_space<vmem>>, %arg3: memref<1x512xf32, #tpu.memory_space<vmem>>, %arg4: memref<512x512xbf16, #tpu.memory_space<vmem>>, %arg5: memref<1x512xf32, #tpu.memory_space<vmem>>, %arg6: memref<512x128xbf16, #tpu.memory_space<vmem>>, %arg7: memref<1x128xf32, #tpu.memory_space<vmem>>, %arg8: memref<128x128xbf16, #tpu.memory_space<vmem>>, %arg9: memref<1x128xf32, #tpu.memory_space<vmem>>, %arg10: memref<8x128xbf16, #tpu.memory_space<vmem>>) attributes {dimension_semantics = [#tpu.dimension_semantics<parallel>], iteration_bounds = array<i64: 1>, scalar_prefetch = 0 : i64, scratch_operands = 0 : i64, tpu.core_type = #tpu.core_type<tc>, window_params = [{transform_indices = @transform_0, window_bounds = array<i64: 8, 32>}, {pipeline_mode = #tpu.pipeline_mode<synchronous>, transform_indices = @transform_1, window_bounds = array<i64: 32, 512>}, {pipeline_mode = #tpu.pipeline_mode<synchronous>, transform_indices = @transform_2, window_bounds = array<i64: 1, 512>}, {pipeline_mode = #tpu.pipeline_mode<synchronous>, transform_indices = @transform_3, window_bounds = array<i64: 512, 512>}, {pipeline_mode = #tpu.pipeline_mode<synchronous>, transform_indices = @transform_4, window_bounds = array<i64: 1, 512>}, {pipeline_mode = #tpu.pipeline_mode<synchronous>, transform_indices = @transform_5, window_bounds = array<i64: 512, 128>}, {pipeline_mode = #tpu.pipeline_mode<synchronous>, transform_indices = @transform_6, window_bounds = array<i64: 1, 128>}, {pipeline_mode = #tpu.pipeline_mode<synchronous>, transform_indices = @transform_7, window_bounds = array<i64: 128, 128>}, {pipeline_mode = #tpu.pipeline_mode<synchronous>, transform_indices = @transform_8, window_bounds = array<i64: 1, 128>}, {transform_indices = @transform_9, window_bounds = array<i64: 8, 128>}]} {
    %c0 = arith.constant 0 : index
    %c0_0 = arith.constant 0 : index
    %0 = vector.load %arg1[%c0, %c0_0] : memref<8x32xbf16, #tpu.memory_space<vmem>>, vector<8x32xbf16>
    %c0_1 = arith.constant 0 : index
    %c0_2 = arith.constant 0 : index
    %1 = vector.load %arg2[%c0_1, %c0_2] : memref<32x512xbf16, #tpu.memory_space<vmem>>, vector<32x512xbf16>
    %cst = arith.constant dense<0.000000e+00> : vector<8x512xf32>
    %2 = tpu.matmul %0, %1, %cst {dimension_numbers = #tpu.dot_dimension_numbers<[1], [0], [0], [1], [0, 0, 1, 1], [], []>} : vector<8x32xbf16>, vector<32x512xbf16>, vector<8x512xf32> -> vector<8x512xf32>
    %c0_3 = arith.constant 0 : index
    %c0_4 = arith.constant 0 : index
    %3 = vector.load %arg3[%c0_3, %c0_4] : memref<1x512xf32, #tpu.memory_space<vmem>>, vector<1x512xf32>
    %4 = vector.broadcast %3 : vector<1x512xf32> to vector<8x512xf32>
    %5 = arith.addf %2, %4 : vector<8x512xf32>
    %cst_5 = arith.constant 0.000000e+00 : f32
    %6 = vector.broadcast %cst_5 : f32 to vector<8x512xf32>
    %7 = arith.maximumf %5, %6 : vector<8x512xf32>
    %8 = arith.truncf %7 : vector<8x512xf32> to vector<8x512xbf16>
    %c0_6 = arith.constant 0 : index
    %c0_7 = arith.constant 0 : index
    %9 = vector.load %arg4[%c0_6, %c0_7] : memref<512x512xbf16, #tpu.memory_space<vmem>>, vector<512x512xbf16>
    %cst_8 = arith.constant dense<0.000000e+00> : vector<8x512xf32>
    %10 = tpu.matmul %8, %9, %cst_8 {dimension_numbers = #tpu.dot_dimension_numbers<[1], [0], [0], [1], [0, 0, 1, 1], [], []>} : vector<8x512xbf16>, vector<512x512xbf16>, vector<8x512xf32> -> vector<8x512xf32>
    %c0_9 = arith.constant 0 : index
    %c0_10 = arith.constant 0 : index
    %11 = vector.load %arg5[%c0_9, %c0_10] : memref<1x512xf32, #tpu.memory_space<vmem>>, vector<1x512xf32>
    %12 = vector.broadcast %11 : vector<1x512xf32> to vector<8x512xf32>
    %13 = arith.addf %10, %12 : vector<8x512xf32>
    %cst_11 = arith.constant 0.000000e+00 : f32
    %14 = vector.broadcast %cst_11 : f32 to vector<8x512xf32>
    %15 = arith.maximumf %13, %14 : vector<8x512xf32>
    %16 = arith.truncf %15 : vector<8x512xf32> to vector<8x512xbf16>
    %c0_12 = arith.constant 0 : index
    %c0_13 = arith.constant 0 : index
    %17 = vector.load %arg6[%c0_12, %c0_13] : memref<512x128xbf16, #tpu.memory_space<vmem>>, vector<512x128xbf16>
    %cst_14 = arith.constant dense<0.000000e+00> : vector<8x128xf32>
    %18 = tpu.matmul %16, %17, %cst_14 {dimension_numbers = #tpu.dot_dimension_numbers<[1], [0], [0], [1], [0, 0, 1, 1], [], []>} : vector<8x512xbf16>, vector<512x128xbf16>, vector<8x128xf32> -> vector<8x128xf32>
    %c0_15 = arith.constant 0 : index
    %c0_16 = arith.constant 0 : index
    %19 = vector.load %arg7[%c0_15, %c0_16] : memref<1x128xf32, #tpu.memory_space<vmem>>, vector<1x128xf32>
    %20 = vector.broadcast %19 : vector<1x128xf32> to vector<8x128xf32>
    %21 = arith.addf %18, %20 : vector<8x128xf32>
    %cst_17 = arith.constant 0.000000e+00 : f32
    %22 = vector.broadcast %cst_17 : f32 to vector<8x128xf32>
    %23 = arith.maximumf %21, %22 : vector<8x128xf32>
    %24 = arith.truncf %23 : vector<8x128xf32> to vector<8x128xbf16>
    %c0_18 = arith.constant 0 : index
    %c0_19 = arith.constant 0 : index
    %25 = vector.load %arg8[%c0_18, %c0_19] : memref<128x128xbf16, #tpu.memory_space<vmem>>, vector<128x128xbf16>
    %cst_20 = arith.constant dense<0.000000e+00> : vector<8x128xf32>
    %26 = tpu.matmul %24, %25, %cst_20 {dimension_numbers = #tpu.dot_dimension_numbers<[1], [0], [0], [1], [0, 0, 1, 1], [], []>} : vector<8x128xbf16>, vector<128x128xbf16>, vector<8x128xf32> -> vector<8x128xf32>
    %c0_21 = arith.constant 0 : index
    %c0_22 = arith.constant 0 : index
    %27 = vector.load %arg9[%c0_21, %c0_22] : memref<1x128xf32, #tpu.memory_space<vmem>>, vector<1x128xf32>
    %28 = vector.broadcast %27 : vector<1x128xf32> to vector<8x128xf32>
    %29 = arith.addf %26, %28 : vector<8x128xf32>
    %30 = arith.truncf %29 : vector<8x128xf32> to vector<8x128xbf16>
    %c0_23 = arith.constant 0 : index
    %c0_24 = arith.constant 0 : index
    %31 = vector.load %arg10[%c0_23, %c0_24] : memref<8x128xbf16, #tpu.memory_space<vmem>>, vector<8x128xbf16>
    tpu.vector_store %arg10[%c0_23, %c0_24], %30 {strides = array<i32>} : memref<8x128xbf16, #tpu.memory_space<vmem>>, vector<8x128xbf16>,
    return
  }
  func.func @transform_0(%arg0: i32) -> (i32, i32) {
    %c0_i32 = arith.constant 0 : i32
    %c0_i32_0 = arith.constant 0 : i32
    return %arg0, %c0_i32 : i32, i32
  }
  func.func @transform_1(%arg0: i32) -> (i32, i32) {
    %c0_i32 = arith.constant 0 : i32
    %c0_i32_0 = arith.constant 0 : i32
    %c0_i32_1 = arith.constant 0 : i32
    return %c0_i32, %c0_i32_0 : i32, i32
  }
  func.func @transform_2(%arg0: i32) -> (i32, i32) {
    %c0_i32 = arith.constant 0 : i32
    %c0_i32_0 = arith.constant 0 : i32
    %c0_i32_1 = arith.constant 0 : i32
    return %c0_i32, %c0_i32_0 : i32, i32
  }
  func.func @transform_3(%arg0: i32) -> (i32, i32) {
    %c0_i32 = arith.constant 0 : i32
    %c0_i32_0 = arith.constant 0 : i32
    %c0_i32_1 = arith.constant 0 : i32
    return %c0_i32, %c0_i32_0 : i32, i32
  }
  func.func @transform_4(%arg0: i32) -> (i32, i32) {
    %c0_i32 = arith.constant 0 : i32
    %c0_i32_0 = arith.constant 0 : i32
    %c0_i32_1 = arith.constant 0 : i32
    return %c0_i32, %c0_i32_0 : i32, i32
  }
  func.func @transform_5(%arg0: i32) -> (i32, i32) {
    %c0_i32 = arith.constant 0 : i32
    %c0_i32_0 = arith.constant 0 : i32
    %c0_i32_1 = arith.constant 0 : i32
    return %c0_i32, %c0_i32_0 : i32, i32
  }
  func.func @transform_6(%arg0: i32) -> (i32, i32) {
    %c0_i32 = arith.constant 0 : i32
    %c0_i32_0 = arith.constant 0 : i32
    %c0_i32_1 = arith.constant 0 : i32
    return %c0_i32, %c0_i32_0 : i32, i32
  }
  func.func @transform_7(%arg0: i32) -> (i32, i32) {
    %c0_i32 = arith.constant 0 : i32
    %c0_i32_0 = arith.constant 0 : i32
    %c0_i32_1 = arith.constant 0 : i32
    return %c0_i32, %c0_i32_0 : i32, i32
  }
  func.func @transform_8(%arg0: i32) -> (i32, i32) {
    %c0_i32 = arith.constant 0 : i32
    %c0_i32_0 = arith.constant 0 : i32
    %c0_i32_1 = arith.constant 0 : i32
    return %c0_i32, %c0_i32_0 : i32, i32
  }
  func.func @transform_9(%arg0: i32) -> (i32, i32) {
    %c0_i32 = arith.constant 0 : i32
    %c0_i32_0 = arith.constant 0 : i32
    return %arg0, %c0_i32 : i32, i32
  }
}

</mosaic_0001>

<bundles_post_ra>
// kernel: tpu_custom_call.1
= control target key start
LH: loop header
LB: loop body
LE: loop exit
PB: predicated region body
PF: predicated region fallthrough
CT: control target
= control target key end

     0   :  { %14 = vsyncpa [#allocation3], 0  ;;  %s2563_s0 = inlined_call_operand.hbm [shape: bf16[8,32], index: 0, kind: input, shape index: {}]   ;;  %s2564_s1 = inlined_call_operand.hbm [shape: bf16[32,512], index: 1, kind: input, shape index: {}]   ;;  %s2565_s2 = inlined_call_operand.vmem [shape: f32[1,512], index: 2, kind: input, shape index: {}]   ;;  %s2566_s3 = inlined_call_operand.hbm [shape: bf16[512,512], index: 3, kind: input, shape index: {}]   ;;  %s2567_s4 = inlined_call_operand.vmem [shape: f32[1,512], index: 4, kind: input, shape index: {}]   ;;  %s2568_s5 = inlined_call_operand.hbm [shape: bf16[512,128], index: 5, kind: input, shape index: {}]   ;;  %s2569_s6 = inlined_call_operand.vmem [shape: f32[1,128], index: 6, kind: input, shape index: {}]   ;;  %s2570_s7 = inlined_call_operand.hbm [shape: bf16[128,128], index: 7, kind: input, shape index: {}]   ;;  %s2571_s8 = inlined_call_operand.vmem [shape: f32[1,128], index: 8, kind: input, shape index: {}]   ;;  %s2572_s9 = inlined_call_operand.hbm [shape: bf16[8,128], index: 9, kind: output, shape index: {}]  }
   0x1   :  { %15 = vsyncpa [#allocation6], 0 }
   0x2   :  { %16 = vsyncpa [#allocation9], 0 }
   0x3   :  { %17 = vsyncpa [#allocation4], 0  ;;  %s2364_s30 = smov [#allocation5]   ;;  %s2224_s13 = scalar_lea.hbm %s2564_s1, 1024 }
   0x4   :  { %s33_s10 = sshll.u32 %s2364_s30, 4  ;;  %p2225_p0 = scmp.ne.s32.totalorder %s2564_s1, %s2224_s13  ;;  %s34_s10 = int_to_ptr.vmem [resolvable:$true] %s33_s10 }
   0x5   :  { %p2228_p1 = scmp.lt.u32.totalorder %s2224_s13, %s2564_s1 }
   0x7   :  { %p2230_p2 = pnand %p2228_p1, %p2225_p0 }
   0x9   :  { %2233 = shalt.err (!%p2230_p2)
}
   0xa   :  { %s2234_s18 = scalar_lea.vmem %s34_s10, 1024  ;;  %p2239_p4 = scmp.lt.s32.totalorder %s34_s10, %s34_s10 }
   0xb   :  { %p2235_p3 = scmp.ne.s32.totalorder %s34_s10, %s2234_s18  ;;  %p2240_p5 = scmp.lt.s32.totalorder %s2234_s18, %s2234_s18 }
   0xd   :  { %p2241_p6 = por %p2240_p5, %p2239_p4 }
   0xf   :  { %p2242_p7 = pnand %p2241_p6, %p2235_p3 }
  0x11   :  { %2245 = shalt.err (!%p2242_p7)
}
  0x12   :  { %s2365_s19 = smov 256   ;;  %s2366_s20 = smov 16  }
  0x13   :  { %39 = dma.hbm_to_vmem [thread:$0]  %s2564_s1, 1024, %s34_s10, [#allocation6], %s2365_s19, %s2365_s19, %s2366_s20  }
  0x14   :  { %s2367_s23 = smov [#allocation8]   ;;  %s2246_s27 = scalar_lea.hbm %s2568_s5, 4096 }
  0x15   :  { %s61_s24 = sshll.u32 %s2367_s23, 4  ;;  %p2247_p8 = scmp.ne.s32.totalorder %s2568_s5, %s2246_s27  ;;  %s62_s24 = int_to_ptr.vmem [resolvable:$true] %s61_s24 }
  0x16   :  { %p2250_p9 = scmp.lt.u32.totalorder %s2246_s27, %s2568_s5 }
  0x18   :  { %p2252_p10 = pnand %p2250_p9, %p2247_p8 }
  0x1a   :  { %2255 = shalt.err (!%p2252_p10)
}
  0x1b   :  { %s2256_s12 = scalar_lea.vmem %s62_s24, 4096  ;;  %p2261_p12 = scmp.lt.s32.totalorder %s62_s24, %s62_s24 }
  0x1c   :  { %p2257_p11 = scmp.ne.s32.totalorder %s62_s24, %s2256_s12  ;;  %p2262_p13 = scmp.lt.s32.totalorder %s2256_s12, %s2256_s12 }
  0x1e   :  { %p2263_p0 = por %p2262_p13, %p2261_p12 }
  0x20   :  { %p2264_p1 = pnand %p2263_p0, %p2257_p11 }
  0x22   :  { %2267 = shalt.err (!%p2264_p1)
}
  0x23   :  { %s2368_s1 = smov 64   ;;  %s2369_s10 = smov 4  }
  0x24   :  { %67 = dma.hbm_to_vmem [thread:$0]  %s2568_s5, 4096, %s62_s24, [#allocation9], %s2368_s1, %s2368_s1, %s2369_s10  }
  0x25   :  { %s2370_s15 = smov [#allocation2]   ;;  %s2371_s17 = smov [#allocation7]  }
  0x26   :  { %s24_s16 = sshll.u32 %s2370_s15, 4  ;;  %s47_s18 = sshll.u32 %s2371_s17, 4  ;;  %s25_s16 = int_to_ptr.vmem [resolvable:$true] %s24_s16  ;;  %s2457_s18 = int_to_ptr.vmem [resolvable:$true] %s47_s18 }
  0x27   :  { %s2268_s23 = scalar_lea.hbm %s2563_s0, 64 }
  0x28   :  { %p2269_p2 = scmp.ne.s32.totalorder %s2563_s0, %s2268_s23  ;;  %p2272_p3 = scmp.lt.u32.totalorder %s2268_s23, %s2563_s0 }
  0x2a   :  { %p2274_p4 = pnand %p2272_p3, %p2269_p2 }
  0x2c   :  { %2277 = shalt.err (!%p2274_p4)
}
  0x2d   :  { %s2278_s5 = scalar_lea.vmem %s25_s16, 64  ;;  %p2283_p6 = scmp.lt.s32.totalorder %s25_s16, %s25_s16 }
  0x2e   :  { %p2279_p5 = scmp.ne.s32.totalorder %s25_s16, %s2278_s5  ;;  %p2284_p7 = scmp.lt.s32.totalorder %s2278_s5, %s2278_s5 }
  0x30   :  { %p2285_p8 = por %p2284_p7, %p2283_p6 }
  0x32   :  { %p2286_p9 = pnand %p2285_p8, %p2279_p5 }
  0x34   :  { %2289 = shalt.err (!%p2286_p9)
}
  0x35   :  { %27 = dma.hbm_to_vmem [thread:$0]  %s2563_s0, 64, %s25_s16, [#allocation3]  }
  0x36   :  { %s2290_s12 = scalar_lea.hbm %s2566_s3, 16384 }
  0x37   :  { %p2291_p10 = scmp.ne.s32.totalorder %s2566_s3, %s2290_s12  ;;  %p2294_p11 = scmp.lt.u32.totalorder %s2290_s12, %s2566_s3 }
  0x39   :  { %p2296_p12 = pnand %p2294_p11, %p2291_p10 }
  0x3b   :  { %2299 = shalt.err (!%p2296_p12)
}
  0x3c   :  { %s2300_s21 = scalar_lea.vmem %s2457_s18, 16384  ;;  %p2305_p0 = scmp.lt.s32.totalorder %s2457_s18, %s2457_s18 }
  0x3d   :  { %p2301_p13 = scmp.ne.s32.totalorder %s2457_s18, %s2300_s21  ;;  %p2306_p1 = scmp.lt.s32.totalorder %s2300_s21, %s2300_s21 }
  0x3f   :  { %p2307_p2 = por %p2306_p1, %p2305_p0 }
  0x41   :  { %p2308_p3 = pnand %p2307_p2, %p2301_p13 }
  0x43   :  { %2311 = shalt.err (!%p2308_p3)
}
  0x44   :  { %53 = dma.hbm_to_vmem [thread:$0]  %s2566_s3, 16384, %s2457_s18, [#allocation6], %s2365_s19, %s2365_s19, %s2366_s20  }
  0x45   :  { %s2372_s22 = smov [#allocation10]   ;;  %s2312_s27 = scalar_lea.hbm %s2570_s7, 1024 }
  0x46   :  { %s75_s23 = sshll.u32 %s2372_s22, 4  ;;  %p2313_p4 = scmp.ne.s32.totalorder %s2570_s7, %s2312_s27  ;;  %s76_s23 = int_to_ptr.vmem [resolvable:$true] %s75_s23 }
  0x47   :  { %p2316_p5 = scmp.lt.u32.totalorder %s2312_s27, %s2570_s7 }
  0x49   :  { %p2318_p6 = pnand %p2316_p5, %p2313_p4 }
  0x4b   :  { %2321 = shalt.err (!%p2318_p6)
}
  0x4c   :  { %s2322_s30 = scalar_lea.vmem %s76_s23, 1024  ;;  %p2327_p8 = scmp.lt.s32.totalorder %s76_s23, %s76_s23 }
  0x4d   :  { %p2323_p7 = scmp.ne.s32.totalorder %s76_s23, %s2322_s30  ;;  %p2328_p9 = scmp.lt.s32.totalorder %s2322_s30, %s2322_s30 }
  0x4f   :  { %p2329_p10 = por %p2328_p9, %p2327_p8 }
  0x51   :  { %p2330_p11 = pnand %p2329_p10, %p2323_p7 }
  0x53   :  { %2333 = shalt.err (!%p2330_p11)
}
  0x54   :  { %81 = dma.hbm_to_vmem [thread:$0]  %s2570_s7, 1024, %s76_s23, [#allocation9], %s2368_s1, %s2368_s1, %s2369_s10  }
  0x55   :  { %2356 = dma.done.wait [#allocation3], 64  }
  0x56   :  { %2357 = vsyncadd [#allocation3], 4294967232 }
  0x57   :  { %2358 = dma.done.wait [#allocation6], 17408  }
  0x58   :  { %2359 = vsyncadd [#allocation6], 4294949888 }
  0x59   :  { %2360 = dma.done.wait [#allocation9], 5120  }
  0x5a   :  { %2361 = vsyncadd [#allocation9], 4294962176  ;;  %v2373_v0 = vmov 0   ;;  %v1980_v1 = vld [vmem:[#allocation5 + $0x4] ss:$16 sps:$4 sm:$0xff]   ;;  %vm171_vm0 = vcmask 261120  }
  0x5b   :  { %207 = vmatprep.mubr.bf16.mxu1 %v2373_v0  ;;  %v1982_v2 = vld [vmem:[#allocation5] ss:$16 sps:$4 sm:$0xff]   ;;  %175 = vmatprep.subr.bf16.mxu1 %v1980_v1  ;;  %v1983_v3 = vld [vmem:[#allocation5 + $0x24] ss:$16 sps:$4 sm:$0xff]   ;;  %v1988_v5 = vld [vmem:[#allocation5 + $0xc] ss:$16 sps:$4 sm:$0xff]  }
  0x5c   :  { %176 = vmatpush1.bf16.msra.mxu1 %v1982_v2  ;;  %v1985_v4 = vld [vmem:[#allocation5 + $0x20] ss:$16 sps:$4 sm:$0xff]   ;;  %v100_v6 = vld [vmem:[#allocation2] sm:$0xf]  ;;  %v1992_v7 = vld [vmem:[#allocation7 + $0x4] ss:$16 sps:$4 sm:$0xff]  }
  0x5d   :  { %177 = vmatprep.subr.bf16.mxu1 %v1983_v3  ;;  %v1986_v8 = vld [vmem:[#allocation5 + $0x8] ss:$16 sps:$4 sm:$0xff]   ;;  %v1991_v9 = vld [vmem:[#allocation5 + $0x2c] ss:$16 sps:$4 sm:$0xff]   ;;  %1055 = vmatprep.subr.bf16.mxu0 %v1992_v7  ;;  %v1997_v10 = vld [vmem:[#allocation7] ss:$16 sps:$4 sm:$0xff]  }
  0x5e   :  { %v1998_v11 = vld [vmem:[#allocation7 + $0x24] ss:$16 sps:$4 sm:$0xff]   ;;  %v1989_v12 = vld [vmem:[#allocation5 + $0x28] ss:$16 sps:$4 sm:$0xff]   ;;  %1056 = vmatpush1.bf16.msra.mxu0 %v1997_v10  ;;  %v2003_v13 = vld [vmem:[#allocation7 + $0x20] ss:$16 sps:$4 sm:$0xff]  }
  0x5f   :  { %v2004_v14 = vld [vmem:[#allocation7 + $0x44] ss:$16 sps:$4 sm:$0xff]   ;;  %v1996_v15 = vld [vmem:[#allocation7 + $0xc] ss:$16 sps:$4 sm:$0xff]   ;;  %1057 = vmatprep.subr.bf16.mxu0 %v1998_v11  ;;  %v2009_v16 = vld [vmem:[#allocation7 + $0x40] ss:$16 sps:$4 sm:$0xff]  }
  0x60   :  { %178 = vmatpush1.bf16.msra.mxu1 %v1985_v4  ;;  %v1994_v17 = vld [vmem:[#allocation7 + $0x8] ss:$16 sps:$4 sm:$0xff]   ;;  %v2010_v18 = vld [vmem:[#allocation7 + $0x64] ss:$16 sps:$4 sm:$0xff]   ;;  %v2002_v19 = vld [vmem:[#allocation7 + $0x2c] ss:$16 sps:$4 sm:$0xff]  }
  0x61   :  { %216 = vmatprep.subr.bf16.mxu1 %v1988_v5  ;;  %v2000_v20 = vld [vmem:[#allocation7 + $0x28] ss:$16 sps:$4 sm:$0xff]   ;;  %v2015_v21 = vld [vmem:[#allocation7 + $0x60] ss:$16 sps:$4 sm:$0xff]   ;;  %v2016_v22 = vld [vmem:[#allocation7 + $0x84] ss:$16 sps:$4 sm:$0xff]  }
  0x62   :  { %1058 = vmatpush1.bf16.msra.mxu0 %v2003_v13  ;;  %v2008_v23 = vld [vmem:[#allocation7 + $0x4c] ss:$16 sps:$4 sm:$0xff]   ;;  %v2021_v24 = vld [vmem:[#allocation7 + $0x80] ss:$16 sps:$4 sm:$0xff]   ;;  %v2006_v25 = vld [vmem:[#allocation7 + $0x48] ss:$16 sps:$4 sm:$0xff]  }
  0x63   :  { %1710 = vmatmul.mubr.msk.bf16.vlgmr.msra.gmra.mrb[0].mxu1 %vm171_vm0, %v100_v6  ;;  %1059 = vmatprep.subr.bf16.mxu0 %v2004_v14  ;;  %v2022_v26 = vld [vmem:[#allocation7 + $0xa4] ss:$16 sps:$4 sm:$0xff]   ;;  %v2014_v27 = vld [vmem:[#allocation7 + $0x6c] ss:$16 sps:$4 sm:$0xff]   ;;  %v2012_v28 = vld [vmem:[#allocation7 + $0x68] ss:$16 sps:$4 sm:$0xff]  }
  0x64   :  { %217 = vmatpush1.bf16.msra.mxu1 %v1986_v8  ;;  %248 = vmatprep.mubr.bf16.mxu1 %v2373_v0  ;;  %v2027_v29 = vld [vmem:[#allocation7 + $0xa0] ss:$16 sps:$4 sm:$0xff]   ;;  %v2028_v30 = vld [vmem:[#allocation7 + $0xc4] ss:$16 sps:$4 sm:$0xff]   ;;  %v2020_v31 = vld [vmem:[#allocation7 + $0x8c] ss:$16 sps:$4 sm:$0xff]  }
  0x65   :  { %218 = vmatprep.subr.bf16.mxu1 %v1991_v9  ;;  %v2033_v32 = vld [vmem:[#allocation7 + $0xc0] ss:$16 sps:$4 sm:$0xff]   ;;  %v2018_v33 = vld [vmem:[#allocation7 + $0x88] ss:$16 sps:$4 sm:$0xff]   ;;  %v2034_v34 = vld [vmem:[#allocation7 + $0xe4] ss:$16 sps:$4 sm:$0xff]  }
  0x66   :  { %1060 = vmatpush1.bf16.msra.mxu0 %v2009_v16  ;;  %v2026_v35 = vld [vmem:[#allocation7 + $0xac] ss:$16 sps:$4 sm:$0xff]   ;;  %v2024_v36 = vld [vmem:[#allocation7 + $0xa8] ss:$16 sps:$4 sm:$0xff]   ;;  %v2039_v37 = vld [vmem:[#allocation7 + $0xe0] ss:$16 sps:$4 sm:$0xff]  }
  0x67   :  { %1061 = vmatprep.subr.bf16.mxu0 %v2010_v18  ;;  %v2040_v38 = vld [vmem:[#allocation7 + $0x104] ss:$16 sps:$4 sm:$0xff]   ;;  %v2032_v39 = vld [vmem:[#allocation7 + $0xcc] ss:$16 sps:$4 sm:$0xff]   ;;  %v2045_v40 = vld [vmem:[#allocation7 + $0x100] ss:$16 sps:$4 sm:$0xff]  }
  0x68   :  { %219 = vmatpush1.bf16.msra.mxu1 %v1989_v12  ;;  %v2030_v41 = vld [vmem:[#allocation7 + $0xc8] ss:$16 sps:$4 sm:$0xff]   ;;  %v2046_v42 = vld [vmem:[#allocation7 + $0x124] ss:$16 sps:$4 sm:$0xff]   ;;  %v2038_v43 = vld [vmem:[#allocation7 + $0xec] ss:$16 sps:$4 sm:$0xff]   ;;  %v111_v12 = vlaneseq }
  0x69   :  { %1137 = vmatprep.subr.bf16.mxu1 %v1996_v15  ;;  %v2036_v44 = vld [vmem:[#allocation7 + $0xe8] ss:$16 sps:$4 sm:$0xff]   ;;  %v2044_v45 = vld [vmem:[#allocation7 + $0x10c] ss:$16 sps:$4 sm:$0xff]   ;;  %v2051_v46 = vld [vmem:[#allocation7 + $0x120] ss:$16 sps:$4 sm:$0xff]  }
  0x6a   :  { %1062 = vmatpush1.bf16.msra.mxu0 %v2015_v21  ;;  %v2052_v47 = vld [vmem:[#allocation7 + $0x144] ss:$16 sps:$4 sm:$0xff]   ;;  %v2057_v48 = vld [vmem:[#allocation7 + $0x140] ss:$16 sps:$4 sm:$0xff]   ;;  %v2042_v49 = vld [vmem:[#allocation7 + $0x108] ss:$16 sps:$4 sm:$0xff]  }
  0x6b   :  { %1711 = vmatmul.mubr.msk.bf16.vlgmr.msra.gmra.mrb[4].mxu1 %vm171_vm0, %v100_v6  ;;  %1063 = vmatprep.subr.bf16.mxu0 %v2016_v22  ;;  %v2058_v50 = vld [vmem:[#allocation7 + $0x164] ss:$16 sps:$4 sm:$0xff]   ;;  %v2050_v51 = vld [vmem:[#allocation7 + $0x12c] ss:$16 sps:$4 sm:$0xff]   ;;  %v2063_v52 = vld [vmem:[#allocation7 + $0x160] ss:$16 sps:$4 sm:$0xff]  }
  0x6c   :  { %1138 = vmatpush1.bf16.msra.mxu1 %v1994_v17  ;;  %v2048_v53 = vld [vmem:[#allocation7 + $0x128] ss:$16 sps:$4 sm:$0xff]   ;;  %v2064_v54 = vld [vmem:[#allocation7 + $0x184] ss:$16 sps:$4 sm:$0xff]   ;;  %v2056_v55 = vld [vmem:[#allocation7 + $0x14c] ss:$16 sps:$4 sm:$0xff]  }
  0x6d   :  { %1139 = vmatprep.subr.bf16.mxu1 %v2002_v19  ;;  %v2069_v56 = vld [vmem:[#allocation7 + $0x180] ss:$16 sps:$4 sm:$0xff]   ;;  %v2054_v57 = vld [vmem:[#allocation7 + $0x148] ss:$16 sps:$4 sm:$0xff]   ;;  %v2070_v58 = vld [vmem:[#allocation7 + $0x1a4] ss:$16 sps:$4 sm:$0xff]  }
  0x6e   :  { %1064 = vmatpush1.bf16.msra.mxu0 %v2021_v24  ;;  %v2062_v59 = vld [vmem:[#allocation7 + $0x16c] ss:$16 sps:$4 sm:$0xff]   ;;  %v2075_v60 = vld [vmem:[#allocation7 + $0x1a0] ss:$16 sps:$4 sm:$0xff]   ;;  %v2060_v61 = vld [vmem:[#allocation7 + $0x168] ss:$16 sps:$4 sm:$0xff]  }
  0x6f   :  { %1065 = vmatprep.subr.bf16.mxu0 %v2022_v26  ;;  %v2068_v62 = vld [vmem:[#allocation7 + $0x18c] ss:$16 sps:$4 sm:$0xff]   ;;  %v2066_v63 = vld [vmem:[#allocation7 + $0x188] ss:$16 sps:$4 sm:$0xff]   ;;  %v2076_v2 = vld [vmem:[#allocation7 + $0x1c4] ss:$16 sps:$4 sm:$0xff]  }
  0x70   :  { %1140 = vmatpush1.bf16.msra.mxu1 %v2000_v20  ;;  %v2074_v0 = vld [vmem:[#allocation7 + $0x1ac] ss:$16 sps:$4 sm:$0xff]   ;;  %v2072_v1 = vld [vmem:[#allocation7 + $0x1a8] ss:$16 sps:$4 sm:$0xff]   ;;  %v2081_v5 = vld [vmem:[#allocation7 + $0x1c0] ss:$16 sps:$4 sm:$0xff]  }
  0x71   :  { %1141 = vmatprep.subr.bf16.mxu1 %v2008_v23  ;;  %v2080_v3 = vld [vmem:[#allocation7 + $0x1cc] ss:$16 sps:$4 sm:$0xff]   ;;  %v2078_v4 = vld [vmem:[#allocation7 + $0x1c8] ss:$16 sps:$4 sm:$0xff]   ;;  %v2082_v6 = vld [vmem:[#allocation7 + $0x1e4] ss:$16 sps:$4 sm:$0xff]  }
  0x72   :  { %1066 = vmatpush1.bf16.msra.mxu0 %v2027_v29  ;;  %v2086_v7 = vld [vmem:[#allocation7 + $0x1ec] ss:$16 sps:$4 sm:$0xff]   ;;  %v2084_v8 = vld [vmem:[#allocation7 + $0x1e8] ss:$16 sps:$4 sm:$0xff]   ;;  %v2087_v9 = vld [vmem:[#allocation7 + $0x1e0] ss:$16 sps:$4 sm:$0xff]  }
  0x73   :  { %1067 = vmatprep.subr.bf16.mxu0 %v2028_v30  ;;  %v2090_v10 = vld [vmem:[#allocation7 + $0x204] ss:$16 sps:$4 sm:$0xff]   ;;  %v2093_v11 = vld [vmem:[#allocation7 + $0x20c] ss:$16 sps:$4 sm:$0xff]   ;;  %v2508_v13 = vshrl.u32 %v111_v12, 7  ;;  %vm2375_vm1 = vmmov 0  }
  0x74   :  { %1142 = vmatpush1.bf16.msra.mxu1 %v2006_v25  ;;  %v2514_v15 = vld [vmem:[%s2565_s2] sm:$0xf]  ;;  %v2088_v29 = vld [vmem:[#allocation7 + $0x200] ss:$16 sps:$4 sm:$0xff]   ;;  %v2091_v30 = vld [vmem:[#allocation7 + $0x208] ss:$16 sps:$4 sm:$0xff]  }
  0x75   :  { %1143 = vmatprep.subr.bf16.mxu1 %v2014_v27  ;;  %v113_v14 = vsub.s32 0, %v2508_v13  ;;  %v117_v16 = vsub.s32 1, %v2508_v13  ;;  %v125_v24 = vsub.s32 3, %v2508_v13  ;;  %v2150_v12 = vld [vmem:[#allocation7 + $0x344] ss:$16 sps:$4 sm:$0xff]   ;;  %s2376_s12 = smov [#allocation11]  }
  0x76   :  { %1068 = vmatpush1.bf16.msra.mxu0 %v2033_v32 }
  0x77   :  { %1069 = vmatprep.subr.bf16.mxu0 %v2034_v34  ;;  %v114_v17 = vrot.slane %v2514_v15, %v113_v14  ;;  %v118_v18 = vrot.slane %v2514_v15, %v117_v16  ;;  %v2099_v34 = vld [vmem:[#allocation7 + $0x22c] ss:$16 sps:$4 sm:$0xff]  }
  0x78   :  { %1144 = vmatpush1.bf16.msra.mxu1 %v2012_v28 }
  0x79   :  { %1145 = vmatprep.subr.bf16.mxu1 %v2020_v31  ;;  %v126_v31 = vrot.slane %v2514_v15, %v125_v24 }
  0x7a   :  { %1070 = vmatpush1.bf16.msra.mxu0 %v2039_v37  ;;  %v2094_v37 = vld [vmem:[#allocation7 + $0x220] ss:$16 sps:$4 sm:$0xff]  }
  0x7b   :  { %1071 = vmatprep.subr.bf16.mxu0 %v2040_v38  ;;  %v2097_v38 = vld [vmem:[#allocation7 + $0x228] ss:$16 sps:$4 sm:$0xff]  }
  0x7c   :  { %1146 = vmatpush1.bf16.msra.mxu1 %v2018_v33  ;;  %v2096_v33 = vld [vmem:[#allocation7 + $0x224] ss:$16 sps:$4 sm:$0xff]  }
  0x7d   :  { %1147 = vmatprep.subr.bf16.mxu1 %v2026_v35 }
  0x7e   :  { %1072 = vmatpush1.bf16.msra.mxu0 %v2045_v40 }
  0x7f   :  { %1073 = vmatprep.subr.bf16.mxu0 %v2046_v42  ;;  %v2105_v42 = vld [vmem:[#allocation7 + $0x24c] ss:$16 sps:$4 sm:$0xff]  }
  0x80   :  { %1148 = vmatpush1.bf16.msra.mxu1 %v2024_v36 }
  0x81   :  { %1149 = vmatprep.subr.bf16.mxu1 %v2032_v39 }
  0x82   :  { %1074 = vmatpush1.bf16.msra.mxu0 %v2051_v46  ;;  %v2103_v46 = vld [vmem:[#allocation7 + $0x248] ss:$16 sps:$4 sm:$0xff]  }
  0x83   :  { %1075 = vmatprep.subr.bf16.mxu0 %v2052_v47 }
  0x84   :  { %1150 = vmatpush1.bf16.msra.mxu1 %v2030_v41  ;;  %v2102_v41 = vld [vmem:[#allocation7 + $0x244] ss:$16 sps:$4 sm:$0xff]  }
  0x85   :  { %1151 = vmatprep.subr.bf16.mxu1 %v2038_v43 }
  0x86   :  { %1076 = vmatpush1.bf16.msra.mxu0 %v2057_v48  ;;  %v2108_v48 = vld [vmem:[#allocation7 + $0x264] ss:$16 sps:$4 sm:$0xff]  }
  0x87   :  { %1077 = vmatprep.subr.bf16.mxu0 %v2058_v50  ;;  %v2106_v50 = vld [vmem:[#allocation7 + $0x260] ss:$16 sps:$4 sm:$0xff]  }
  0x88   :  { %1152 = vmatpush1.bf16.msra.mxu1 %v2036_v44 }
  0x89   :  { %1153 = vmatprep.subr.bf16.mxu1 %v2044_v45  ;;  %v2100_v45 = vld [vmem:[#allocation7 + $0x240] ss:$16 sps:$4 sm:$0xff]  }
  0x8a   :  { %1078 = vmatpush1.bf16.msra.mxu0 %v2063_v52  ;;  %v2114_v52 = vld [vmem:[#allocation7 + $0x284] ss:$16 sps:$4 sm:$0xff]  }
  0x8b   :  { %1079 = vmatprep.subr.bf16.mxu0 %v2064_v54  ;;  %v2112_v54 = vld [vmem:[#allocation7 + $0x280] ss:$16 sps:$4 sm:$0xff]  }
  0x8c   :  { %1154 = vmatpush1.bf16.msra.mxu1 %v2042_v49  ;;  %v2111_v49 = vld [vmem:[#allocation7 + $0x26c] ss:$16 sps:$4 sm:$0xff]  }
  0x8d   :  { %1155 = vmatprep.subr.bf16.mxu1 %v2050_v51  ;;  %v2109_v51 = vld [vmem:[#allocation7 + $0x268] ss:$16 sps:$4 sm:$0xff]  }
  0x8e   :  { %1080 = vmatpush1.bf16.msra.mxu0 %v2069_v56  ;;  %v2120_v56 = vld [vmem:[#allocation7 + $0x2a4] ss:$16 sps:$4 sm:$0xff]  }
  0x8f   :  { %1081 = vmatprep.subr.bf16.mxu0 %v2070_v58  ;;  %v2118_v58 = vld [vmem:[#allocation7 + $0x2a0] ss:$16 sps:$4 sm:$0xff]  }
  0x90   :  { %1156 = vmatpush1.bf16.msra.mxu1 %v2048_v53  ;;  %v2117_v53 = vld [vmem:[#allocation7 + $0x28c] ss:$16 sps:$4 sm:$0xff]  }
  0x91   :  { %1157 = vmatprep.subr.bf16.mxu1 %v2056_v55  ;;  %v2115_v55 = vld [vmem:[#allocation7 + $0x288] ss:$16 sps:$4 sm:$0xff]  }
  0x92   :  { %1082 = vmatpush1.bf16.msra.mxu0 %v2075_v60  ;;  %v2126_v60 = vld [vmem:[#allocation7 + $0x2c4] ss:$16 sps:$4 sm:$0xff]  }
  0x93   :  { %1083 = vmatprep.subr.bf16.mxu0 %v2076_v2  ;;  %v2130_v2 = vld [vmem:[#allocation7 + $0x2e0] ss:$16 sps:$4 sm:$0xff]  }
  0x94   :  { %1158 = vmatpush1.bf16.msra.mxu1 %v2054_v57  ;;  %v2123_v57 = vld [vmem:[#allocation7 + $0x2ac] ss:$16 sps:$4 sm:$0xff]  }
  0x95   :  { %1159 = vmatprep.subr.bf16.mxu1 %v2062_v59  ;;  %v2121_v59 = vld [vmem:[#allocation7 + $0x2a8] ss:$16 sps:$4 sm:$0xff]  }
  0x96   :  { %1084 = vmatpush1.bf16.msra.mxu0 %v2081_v5  ;;  %v2141_v5 = vld [vmem:[#allocation7 + $0x30c] ss:$16 sps:$4 sm:$0xff]  }
  0x97   :  { %1085 = vmatprep.subr.bf16.mxu0 %v2082_v6  ;;  %v2136_v6 = vld [vmem:[#allocation7 + $0x300] ss:$16 sps:$4 sm:$0xff]  }
  0x98   :  { %1160 = vmatpush1.bf16.msra.mxu1 %v2060_v61  ;;  %v2129_v61 = vld [vmem:[#allocation7 + $0x2cc] ss:$16 sps:$4 sm:$0xff]  }
  0x99   :  { %1161 = vmatprep.subr.bf16.mxu1 %v2068_v62  ;;  %v2124_v62 = vld [vmem:[#allocation7 + $0x2c0] ss:$16 sps:$4 sm:$0xff]  }
  0x9a   :  { %1086 = vmatpush1.bf16.msra.mxu0 %v2087_v9  ;;  %v2147_v9 = vld [vmem:[#allocation7 + $0x32c] ss:$16 sps:$4 sm:$0xff]  }
  0x9b   :  { %1096 = vmatprep.subr.bf16.mxu0 %v2090_v10  ;;  %v2142_v10 = vld [vmem:[#allocation7 + $0x320] ss:$16 sps:$4 sm:$0xff]  }
  0x9c   :  { %1162 = vmatpush1.bf16.msra.mxu1 %v2066_v63  ;;  %v2127_v63 = vld [vmem:[#allocation7 + $0x2c8] ss:$16 sps:$4 sm:$0xff]  }
  0x9d   :  { %1163 = vmatprep.subr.bf16.mxu1 %v2074_v0  ;;  %v2132_v0 = vld [vmem:[#allocation7 + $0x2e4] ss:$16 sps:$4 sm:$0xff]  }
  0xa0   :  { %1164 = vmatpush1.bf16.msra.mxu1 %v2072_v1  ;;  %v2135_v1 = vld [vmem:[#allocation7 + $0x2ec] ss:$16 sps:$4 sm:$0xff]  }
  0xa1   :  { %1165 = vmatprep.subr.bf16.mxu1 %v2080_v3  ;;  %v2133_v3 = vld [vmem:[#allocation7 + $0x2e8] ss:$16 sps:$4 sm:$0xff]  }
  0xa4   :  { %1166 = vmatpush1.bf16.msra.mxu1 %v2078_v4  ;;  %v2138_v4 = vld [vmem:[#allocation7 + $0x304] ss:$16 sps:$4 sm:$0xff]  }
  0xa5   :  { %1167 = vmatprep.subr.bf16.mxu1 %v2086_v7  ;;  %v2139_v7 = vld [vmem:[#allocation7 + $0x308] ss:$16 sps:$4 sm:$0xff]  }
  0xa8   :  { %1168 = vmatpush1.bf16.msra.mxu1 %v2084_v8  ;;  %v2144_v8 = vld [vmem:[#allocation7 + $0x324] ss:$16 sps:$4 sm:$0xff]  }
  0xa9   :  { %1178 = vmatprep.subr.bf16.mxu1 %v2093_v11  ;;  %v2145_v11 = vld [vmem:[#allocation7 + $0x328] ss:$16 sps:$4 sm:$0xff]  }
 0x136   :  { %v209_v19 = vpop.f32.mrb[0].mxu1 }
 0x137   :  { %v210_v20 = vadd.f32 %v209_v19, %v114_v17  ;;  %v211_v21 = vpop.f32.mrb[1].mxu1  ;;  %v2153_v17 = vld [vmem:[#allocation7 + $0x34c] ss:$16 sps:$4 sm:$0xff]   ;;  %v2151_v19 = vld [vmem:[#allocation7 + $0x348] ss:$16 sps:$4 sm:$0xff]  }
 0x138   :  { %v212_v22 = vadd.f32 %v211_v21, %v118_v18  ;;  %v213_v23 = vpop.f32.mrb[2].mxu1  ;;  %v2148_v18 = vld [vmem:[#allocation7 + $0x340] ss:$16 sps:$4 sm:$0xff]   ;;  %v2159_v21 = vld [vmem:[#allocation7 + $0x36c] ss:$16 sps:$4 sm:$0xff]  }
 0x139   :  { %v257_v25 = vmax.f32 %v210_v20, 0.0  ;;  %v214_v26 = vpop.f32.mrb[3].mxu1  ;;  %v2156_v20 = vld [vmem:[#allocation7 + $0x364] ss:$16 sps:$4 sm:$0xff]   ;;  %v2157_v23 = vld [vmem:[#allocation7 + $0x368] ss:$16 sps:$4 sm:$0xff]  }
 0x13a   :  { %v258_v27 = vmax.f32 %v212_v22, 0.0  ;;  %v2154_v22 = vld [vmem:[#allocation7 + $0x360] ss:$16 sps:$4 sm:$0xff]   ;;  %v2165_v26 = vld [vmem:[#allocation7 + $0x38c] ss:$16 sps:$4 sm:$0xff]  }
 0x13b   :  { %v261_v32 = vpack.c.bf16 %v257_v25, %v257_v25  ;;  %v2162_v25 = vld [vmem:[#allocation7 + $0x384] ss:$16 sps:$4 sm:$0xff]  }
 0x13c   :  { %v262_v28 = vpack.c.bf16 %v258_v27, %v258_v27  ;;  %v2160_v27 = vld [vmem:[#allocation7 + $0x380] ss:$16 sps:$4 sm:$0xff]  }
 0x13e   :  { %1087 = vmatprep.mubr.bf16.mxu0 %v262_v28  ;;  %1169 = vmatprep.mubr.bf16.mxu1 %v262_v28  ;;  %v2527_v35 = vpop.f32.mrb[4].mxu1  ;;  %v2163_v28 = vld [vmem:[#allocation7 + $0x388] ss:$16 sps:$4 sm:$0xff]  }
 0x13f   :  { %1088 = vmatmul.mubr.bf16.vlgmr.msra.gmra.mrb[0].mxu0 %v261_v32  ;;  %1170 = vmatmul.mubr.bf16.vlgmr.msra.gmra.mrb[8].mxu1 %v261_v32  ;;  %v252_v36 = vpop.f32.mrb[5].mxu1  ;;  %v2166_v32 = vld [vmem:[#allocation7 + $0x3a0] ss:$16 sps:$4 sm:$0xff]  }
 0x140   :  { %1097 = vmatpush1.bf16.msra.mxu0 %v2088_v29  ;;  %1179 = vmatpush1.bf16.msra.mxu1 %v2091_v30  ;;  %v253_v39 = vadd.f32 %v252_v36, %v126_v31  ;;  %v254_v40 = vpop.f32.mrb[6].mxu1  ;;  %v121_v29 = vsub.s32 2, %v2508_v13  ;;  %v2168_v30 = vld [vmem:[#allocation7 + $0x3a4] ss:$16 sps:$4 sm:$0xff]   ;;  %v2171_v31 = vld [vmem:[#allocation7 + $0x3ac] ss:$16 sps:$4 sm:$0xff]  }
 0x141   :  { %1098 = vmatprep.subr.bf16.mxu0 %v2096_v33  ;;  %1180 = vmatprep.subr.bf16.mxu1 %v2099_v34  ;;  %v255_v43 = vpop.f32.mrb[7].mxu1  ;;  %v2169_v33 = vld [vmem:[#allocation7 + $0x3a8] ss:$16 sps:$4 sm:$0xff]   ;;  %v2174_v36 = vld [vmem:[#allocation7 + $0x3c4] ss:$16 sps:$4 sm:$0xff]  }
 0x142   :  { %v260_v44 = vmax.f32 %v253_v39, 0.0  ;;  %v122_v34 = vrot.slane %v2514_v15, %v121_v29  ;;  %v2175_v39 = vld [vmem:[#allocation7 + $0x3c8] ss:$16 sps:$4 sm:$0xff]   ;;  %v2178_v43 = vld [vmem:[#allocation7 + $0x3e0] ss:$16 sps:$4 sm:$0xff]  }
 0x143   :  { %v2184_v15 = vld [vmem:[#allocation8 + $0x40] sm:$0xff]  }
 0x144   :  { %1099 = vmatpush1.bf16.msra.mxu0 %v2094_v37  ;;  %1181 = vmatpush1.bf16.msra.mxu1 %v2097_v38  ;;  %v264_v47 = vpack.c.bf16 %v260_v44, %v260_v44  ;;  %v2177_v37 = vld [vmem:[#allocation7 + $0x3cc] ss:$16 sps:$4 sm:$0xff]   ;;  %v2172_v38 = vld [vmem:[#allocation7 + $0x3c0] ss:$16 sps:$4 sm:$0xff]   ;;  %v251_v40 = vadd.f32 %v2527_v35, %v122_v34  ;;  %v2181_v44 = vld [vmem:[#allocation7 + $0x3e8] ss:$16 sps:$4 sm:$0xff]  }
 0x145   :  { %1100 = vmatprep.subr.bf16.mxu0 %v2102_v41  ;;  %1182 = vmatprep.subr.bf16.mxu1 %v2105_v42  ;;  %v2180_v41 = vld [vmem:[#allocation7 + $0x3e4] ss:$16 sps:$4 sm:$0xff]   ;;  %v2183_v42 = vld [vmem:[#allocation7 + $0x3ec] ss:$16 sps:$4 sm:$0xff]  }
 0x146   :  { %1128 = vmatprep.mubr.bf16.mxu0 %v264_v47  ;;  %1210 = vmatprep.mubr.bf16.mxu1 %v264_v47  ;;  %v2186_v47 = vld [vmem:[#allocation8] sm:$0xff]   ;;  %v2188_v35 = vld [vmem:[#allocation8 + $0x48] sm:$0xff]  }
 0x147   :  { %v2216_v13 = vld [vmem:[#allocation10] sm:$0xff]  }
 0x148   :  { %1101 = vmatpush1.bf16.msra.mxu0 %v2100_v45  ;;  %1183 = vmatpush1.bf16.msra.mxu1 %v2103_v46  ;;  %v259_v45 = vmax.f32 %v251_v40, 0.0  ;;  %v2185_v46 = vld [vmem:[#allocation8 + $0xc0] sm:$0xff]  }
 0x149   :  { %1102 = vmatprep.subr.bf16.mxu0 %v2108_v48  ;;  %1184 = vmatprep.subr.bf16.mxu1 %v2111_v49  ;;  %v2187_v48 = vld [vmem:[#allocation8 + $0x80] sm:$0xff]  }
 0x14a   :  { %v263_v49 = vpack.c.bf16 %v259_v45, %v259_v45  ;;  %v2220_v45 = vld [vmem:[#allocation10 + $0x20] sm:$0xff]  }
 0x14c   :  { %1103 = vmatpush1.bf16.msra.mxu0 %v2106_v50  ;;  %1185 = vmatpush1.bf16.msra.mxu1 %v2109_v51  ;;  %v2189_v50 = vld [vmem:[#allocation8 + $0xc8] sm:$0xff]  }
 0x14d   :  { %1104 = vmatprep.subr.bf16.mxu0 %v2114_v52  ;;  %1186 = vmatprep.subr.bf16.mxu1 %v2117_v53  ;;  %v2190_v51 = vld [vmem:[#allocation8 + $0x8] sm:$0xff]   ;;  %v2192_v53 = vld [vmem:[#allocation8 + $0x50] sm:$0xff]  }
 0x14e   :  { %v2191_v52 = vld [vmem:[#allocation8 + $0x88] sm:$0xff]  }
 0x150   :  { %1105 = vmatpush1.bf16.msra.mxu0 %v2112_v54  ;;  %1187 = vmatpush1.bf16.msra.mxu1 %v2115_v55  ;;  %v2193_v54 = vld [vmem:[#allocation8 + $0xd0] sm:$0xff]  }
 0x151   :  { %1106 = vmatprep.subr.bf16.mxu0 %v2120_v56  ;;  %1188 = vmatprep.subr.bf16.mxu1 %v2123_v57  ;;  %v2194_v55 = vld [vmem:[#allocation8 + $0x10] sm:$0xff]   ;;  %v2196_v57 = vld [vmem:[#allocation8 + $0x58] sm:$0xff]  }
 0x152   :  { %v2195_v56 = vld [vmem:[#allocation8 + $0x90] sm:$0xff]  }
 0x154   :  { %1107 = vmatpush1.bf16.msra.mxu0 %v2118_v58  ;;  %1189 = vmatpush1.bf16.msra.mxu1 %v2121_v59  ;;  %v2197_v58 = vld [vmem:[#allocation8 + $0xd8] sm:$0xff]  }
 0x155   :  { %1108 = vmatprep.subr.bf16.mxu0 %v2126_v60  ;;  %1190 = vmatprep.subr.bf16.mxu1 %v2129_v61  ;;  %v2198_v59 = vld [vmem:[#allocation8 + $0x18] sm:$0xff]   ;;  %v2200_v61 = vld [vmem:[#allocation8 + $0x60] sm:$0xff]  }
 0x156   :  { %v2199_v60 = vld [vmem:[#allocation8 + $0x98] sm:$0xff]  }
 0x158   :  { %1109 = vmatpush1.bf16.msra.mxu0 %v2124_v62  ;;  %1191 = vmatpush1.bf16.msra.mxu1 %v2127_v63  ;;  %v2201_v62 = vld [vmem:[#allocation8 + $0xe0] sm:$0xff]  }
 0x159   :  { %1110 = vmatprep.subr.bf16.mxu0 %v2132_v0  ;;  %1192 = vmatprep.subr.bf16.mxu1 %v2135_v1  ;;  %v2202_v63 = vld [vmem:[#allocation8 + $0x20] sm:$0xff]   ;;  %v2204_v1 = vld [vmem:[#allocation8 + $0x68] sm:$0xff]  }
 0x15a   :  { %v2203_v0 = vld [vmem:[#allocation8 + $0xa0] sm:$0xff]  }
 0x15c   :  { %1111 = vmatpush1.bf16.msra.mxu0 %v2130_v2  ;;  %1193 = vmatpush1.bf16.msra.mxu1 %v2133_v3  ;;  %v2205_v2 = vld [vmem:[#allocation8 + $0xe8] sm:$0xff]  }
 0x15d   :  { %1112 = vmatprep.subr.bf16.mxu0 %v2138_v4  ;;  %1194 = vmatprep.subr.bf16.mxu1 %v2141_v5  ;;  %v2206_v3 = vld [vmem:[#allocation8 + $0x28] sm:$0xff]   ;;  %v2208_v5 = vld [vmem:[#allocation8 + $0x70] sm:$0xff]  }
 0x15e   :  { %v2207_v4 = vld [vmem:[#allocation8 + $0xa8] sm:$0xff]  }
 0x160   :  { %1113 = vmatpush1.bf16.msra.mxu0 %v2136_v6  ;;  %1195 = vmatpush1.bf16.msra.mxu1 %v2139_v7  ;;  %v2209_v6 = vld [vmem:[#allocation8 + $0xf0] sm:$0xff]  }
 0x161   :  { %1114 = vmatprep.subr.bf16.mxu0 %v2144_v8  ;;  %1196 = vmatprep.subr.bf16.mxu1 %v2147_v9  ;;  %v2210_v7 = vld [vmem:[#allocation8 + $0x30] sm:$0xff]   ;;  %v2212_v9 = vld [vmem:[#allocation8 + $0x78] sm:$0xff]  }
 0x162   :  { %v2211_v8 = vld [vmem:[#allocation8 + $0xb0] sm:$0xff]  }
 0x164   :  { %1115 = vmatpush1.bf16.msra.mxu0 %v2142_v10  ;;  %1197 = vmatpush1.bf16.msra.mxu1 %v2145_v11  ;;  %v2213_v10 = vld [vmem:[#allocation8 + $0xf8] sm:$0xff]  }
 0x165   :  { %1116 = vmatprep.subr.bf16.mxu0 %v2150_v12  ;;  %1198 = vmatprep.subr.bf16.mxu1 %v2153_v17  ;;  %v2214_v11 = vld [vmem:[#allocation8 + $0x38] sm:$0xff]   ;;  %v2374_v17 = vmov 0.0  }
 0x166   :  { %v2215_v12 = vld [vmem:[#allocation8 + $0xb8] sm:$0xff]  }
 0x168   :  { %1117 = vmatpush1.bf16.msra.mxu0 %v2148_v18  ;;  %1199 = vmatpush1.bf16.msra.mxu1 %v2151_v19  ;;  %v393_v18 = vld [vmem:[%s2567_s4] sm:$0xf] }
 0x169   :  { %1118 = vmatprep.subr.bf16.mxu0 %v2156_v20  ;;  %1200 = vmatprep.subr.bf16.mxu1 %v2159_v21  ;;  %v398_v19 = vrot.slane %v393_v18, %v113_v14  ;;  %v406_v20 = vrot.slane %v393_v18, %v121_v29  ;;  %v402_v21 = vrot.slane %v393_v18, %v117_v16 }
 0x16c   :  { %1119 = vmatpush1.bf16.msra.mxu0 %v2154_v22  ;;  %1201 = vmatpush1.bf16.msra.mxu1 %v2157_v23  ;;  %v410_v22 = vrot.slane %v393_v18, %v125_v24 }
 0x16d   :  { %1120 = vmatprep.subr.bf16.mxu0 %v2162_v25  ;;  %1202 = vmatprep.subr.bf16.mxu1 %v2165_v26 }
 0x170   :  { %1121 = vmatpush1.bf16.msra.mxu0 %v2160_v27  ;;  %1203 = vmatpush1.bf16.msra.mxu1 %v2163_v28 }
 0x171   :  { %1122 = vmatprep.subr.bf16.mxu0 %v2168_v30  ;;  %1204 = vmatprep.subr.bf16.mxu1 %v2171_v31 }
 0x174   :  { %1123 = vmatpush1.bf16.msra.mxu0 %v2166_v32  ;;  %1205 = vmatpush1.bf16.msra.mxu1 %v2169_v33 }
 0x175   :  { %1124 = vmatprep.subr.bf16.mxu0 %v2174_v36  ;;  %1206 = vmatprep.subr.bf16.mxu1 %v2177_v37 }
 0x178   :  { %1125 = vmatpush1.bf16.msra.mxu0 %v2172_v38  ;;  %1207 = vmatpush1.bf16.msra.mxu1 %v2175_v39 }
 0x179   :  { %1126 = vmatprep.subr.bf16.mxu0 %v2180_v41  ;;  %1208 = vmatprep.subr.bf16.mxu1 %v2183_v42  ;;  %v2217_v42 = vld [vmem:[#allocation10 + $0x8] sm:$0xff]  }
 0x17c   :  { %1127 = vmatpush1.bf16.msra.mxu0 %v2178_v43  ;;  %1209 = vmatpush1.bf16.msra.mxu1 %v2181_v44  ;;  %v2218_v43 = vld [vmem:[#allocation10 + $0x10] sm:$0xff]   ;;  %v2219_v44 = vld [vmem:[#allocation10 + $0x18] sm:$0xff]  }
 0x17d   :  { %1882 = vmatprep.subr.bf16.mxu0 %v2184_v15  ;;  %1904 = vmatprep.subr.bf16.mxu1 %v2185_v46  ;;  %v2221_v15 = vld [vmem:[#allocation10 + $0x28] sm:$0xff]   ;;  %v2222_v46 = vld [vmem:[#allocation10 + $0x30] sm:$0xff]  }
 0x17f   :  { %1129 = vmatmul.mubr.bf16.vlgmr.msra.gmra.mrb[0].mxu0 %v263_v49  ;;  %1211 = vmatmul.mubr.bf16.vlgmr.msra.gmra.mrb[8].mxu1 %v263_v49 }
 0x180   :  { %1883 = vmatpush3.bf16.msra.mxu0 %v2186_v47  ;;  %1905 = vmatpush3.bf16.msra.mxu1 %v2187_v48  ;;  %v2223_v47 = vld [vmem:[#allocation10 + $0x38] sm:$0xff]  }
 0x181   :  { %1884 = vmatprep.subr.bf16.mxu0 %v2188_v35  ;;  %1906 = vmatprep.subr.bf16.mxu1 %v2189_v50  ;;  %v1840_v35 = vld [vmem:[%s2569_s6] ss:$0 sm:$0xff]  ;;  %s1691_s6 = sshll.u32 %s2376_s12, 4  ;;  %s1692_s6 = int_to_ptr.vmem [resolvable:$true] %s1691_s6 }
 0x182   :  { %s2334_s13 = scalar_lea.vmem %s1692_s6, 64  ;;  %p2339_p13 = scmp.lt.s32.totalorder %s1692_s6, %s1692_s6 }
 0x183   :  { %p2335_p12 = scmp.ne.s32.totalorder %s1692_s6, %s2334_s13  ;;  %p2340_p0 = scmp.lt.s32.totalorder %s2334_s13, %s2334_s13 }
 0x184   :  { %1885 = vmatpush3.bf16.msra.mxu0 %v2190_v51  ;;  %1907 = vmatpush3.bf16.msra.mxu1 %v2191_v52 }
 0x185   :  { %1886 = vmatprep.subr.bf16.mxu0 %v2192_v53  ;;  %1908 = vmatprep.subr.bf16.mxu1 %v2193_v54  ;;  %p2341_p1 = por %p2340_p0, %p2339_p13 }
 0x187   :  { %p2342_p2 = pnand %p2341_p1, %p2335_p12 }
 0x188   :  { %1887 = vmatpush3.bf16.msra.mxu0 %v2194_v55  ;;  %1909 = vmatpush3.bf16.msra.mxu1 %v2195_v56 }
 0x189   :  { %1888 = vmatprep.subr.bf16.mxu0 %v2196_v57  ;;  %1910 = vmatprep.subr.bf16.mxu1 %v2197_v58 }
 0x18c   :  { %1889 = vmatpush3.bf16.msra.mxu0 %v2198_v59  ;;  %1911 = vmatpush3.bf16.msra.mxu1 %v2199_v60 }
 0x18d   :  { %1890 = vmatprep.subr.bf16.mxu0 %v2200_v61  ;;  %1912 = vmatprep.subr.bf16.mxu1 %v2201_v62  ;;  %v1873_v62 = vld [vmem:[%s2571_s8] ss:$0 sm:$0xff] }
 0x190   :  { %1891 = vmatpush3.bf16.msra.mxu0 %v2202_v63  ;;  %1913 = vmatpush3.bf16.msra.mxu1 %v2203_v0 }
 0x191   :  { %1892 = vmatprep.subr.bf16.mxu0 %v2204_v1  ;;  %1914 = vmatprep.subr.bf16.mxu1 %v2205_v2 }
 0x194   :  { %1893 = vmatpush3.bf16.msra.mxu0 %v2206_v3  ;;  %1915 = vmatpush3.bf16.msra.mxu1 %v2207_v4 }
 0x195   :  { %1894 = vmatprep.subr.bf16.mxu0 %v2208_v5  ;;  %1916 = vmatprep.subr.bf16.mxu1 %v2209_v6 }
 0x198   :  { %1895 = vmatpush3.bf16.msra.mxu0 %v2210_v7  ;;  %1917 = vmatpush3.bf16.msra.mxu1 %v2211_v8 }
 0x199   :  { %1896 = vmatprep.subr.bf16.mxu0 %v2212_v9  ;;  %1918 = vmatprep.subr.bf16.mxu1 %v2213_v10 }
 0x19c   :  { %1897 = vmatpush3.bf16.msra.mxu0 %v2214_v11  ;;  %1919 = vmatpush3.bf16.msra.mxu1 %v2215_v12 }
 0x19d   :  { %1935 = vmatprep.subr.bf16.mxu0 %v2374_v17 }
 0x252   :  { %v1130_v23 = vpop.f32.mrb[0].mxu0  ;;  %v1212_v25 = vpop.f32.mrb[8].mxu1 }
 0x253   :  { %v1955_v26 = vadd.f32 %v1130_v23, %v398_v19  ;;  %v1957_v27 = vadd.f32 %v1212_v25, %v406_v20  ;;  %v1132_v28 = vpop.f32.mrb[1].mxu0  ;;  %v1214_v30 = vpop.f32.mrb[9].mxu1 }
 0x254   :  { %v1956_v31 = vadd.f32 %v1132_v28, %v402_v21  ;;  %v1958_v32 = vadd.f32 %v1214_v30, %v410_v22  ;;  %v1134_v33 = vpop.f32.mrb[2].mxu0  ;;  %v1216_v34 = vpop.f32.mrb[10].mxu1 }
 0x255   :  { %v1219_v14 = vmax.f32 %v1955_v26, 0.0  ;;  %v1221_v36 = vmax.f32 %v1957_v27, 0.0  ;;  %v1135_v37 = vpop.f32.mrb[3].mxu0  ;;  %v1217_v29 = vpop.f32.mrb[11].mxu1 }
 0x256   :  { %v1220_v38 = vmax.f32 %v1956_v31, 0.0  ;;  %v1222_v39 = vmax.f32 %v1958_v32, 0.0 }
 0x257   :  { %v1223_v24 = vpack.c.bf16 %v1219_v14, %v1219_v14  ;;  %v1225_v41 = vpack.c.bf16 %v1221_v36, %v1221_v36 }
 0x258   :  { %v1224_v16 = vpack.c.bf16 %v1220_v38, %v1220_v38  ;;  %v1226_v40 = vpack.c.bf16 %v1222_v39, %v1222_v39 }
 0x25a   :  { %1522 = vmatprep.mubr.bf16.mxu0 %v1224_v16  ;;  %1562 = vmatprep.mubr.bf16.mxu1 %v1226_v40 }
 0x25b   :  { %1523 = vmatmul.mubr.bf16.vlgmr.msra.gmra.mrb[4].mxu0 %v1223_v24  ;;  %1563 = vmatmul.mubr.bf16.vlgmr.msra.gmra.mrb[12].mxu1 %v1225_v41 }
 0x25c   :  { %1936 = vmatpush3.bf16.msra.mxu0 %v2216_v13  ;;  %1951 = vmatprep.mubr.msk.bf16.mxu0 %vm2375_vm1, %v2374_v17 }
 0x25d   :  { %1937 = vmatprep.subr.bf16.mxu0 %v2374_v17 }
 0x260   :  { %1938 = vmatpush3.bf16.msra.mxu0 %v2217_v42 }
 0x261   :  { %1939 = vmatprep.subr.bf16.mxu0 %v2374_v17 }
 0x264   :  { %1940 = vmatpush3.bf16.msra.mxu0 %v2218_v43 }
 0x265   :  { %1941 = vmatprep.subr.bf16.mxu0 %v2374_v17 }
 0x268   :  { %1942 = vmatpush3.bf16.msra.mxu0 %v2219_v44 }
 0x269   :  { %1943 = vmatprep.subr.bf16.mxu0 %v2374_v17 }
 0x26c   :  { %1944 = vmatpush3.bf16.msra.mxu0 %v2220_v45 }
 0x26d   :  { %1945 = vmatprep.subr.bf16.mxu0 %v2374_v17 }
 0x270   :  { %1946 = vmatpush3.bf16.msra.mxu0 %v2221_v15 }
 0x271   :  { %1947 = vmatprep.subr.bf16.mxu0 %v2374_v17 }
 0x274   :  { %1948 = vmatpush3.bf16.msra.mxu0 %v2222_v46 }
 0x275   :  { %1949 = vmatprep.subr.bf16.mxu0 %v2374_v17 }
 0x278   :  { %1950 = vmatpush3.bf16.msra.mxu0 %v2223_v47 }
 0x32e   :  { %v1898_v48 = vpop.f32.mrb[4].mxu0  ;;  %v1920_v49 = vpop.f32.mrb[12].mxu1 }
 0x32f   :  { %v1899_v50 = vpop.f32.mrb[5].mxu0  ;;  %v1921_v51 = vpop.f32.mrb[13].mxu1 }
 0x330   :  { %v1900_v52 = vadd.f32 %v1899_v50, %v1898_v48  ;;  %v1922_v53 = vadd.f32 %v1921_v51, %v1920_v49  ;;  %v1901_v54 = vpop.f32.mrb[6].mxu0  ;;  %v1923_v55 = vpop.f32.mrb[14].mxu1 }
 0x331   :  { %v1902_v56 = vpop.f32.mrb[7].mxu0  ;;  %v1924_v57 = vpop.f32.mrb[15].mxu1 }
 0x332   :  { %v1525_v58 = vadd.f32 %v1900_v52, %v1840_v35 }
 0x334   :  { %v1565_v59 = vadd.f32 %v1922_v53, %v1525_v58 }
 0x336   :  { %v1570_v60 = vmax.f32 %v1565_v59, 0.0 }
 0x338   :  { %v1571_v61 = vpack.c.bf16 %v1570_v60, %v1570_v60 }
 0x33a   :  { %1952 = vmatmul.mubr.bf16.vlgmr.msra.gmra.mrb[8].mxu0 %v1571_v61 }
 0x40d   :  { %v1677_v63 = vpop.f32.mrb[8].mxu0 }
 0x40e   :  { %v1678_v0 = vadd.f32 %v1873_v62, %v1677_v63  ;;  %v1953_v1 = vpop.f32.mrb[9].mxu0 }
 0x40f   :  { %v1680_v2 = vpop.f32.mrb[10].mxu0 }
 0x410   :  { %v1683_v3 = vpack.c.bf16 %v1678_v0, %v1678_v0  ;;  %v1954_v4 = vpop.f32.mrb[11].mxu0 }
 0x412   :  { %1684 = vst [vmem:[#allocation11] sm:$0xf] %v1683_v3 }
 0x413   :  { %2345 = shalt.err (!%p2342_p2)
}
 0x414   :  { %s2346_s8 = scalar_lea.hbm %s2572_s9, 64 }
 0x415   :  { %p2347_p3 = scmp.ne.s32.totalorder %s2572_s9, %s2346_s8  ;;  %p2350_p4 = scmp.lt.u32.totalorder %s2346_s8, %s2572_s9 }
 0x417   :  { %p2352_p5 = pnand %p2350_p4, %p2347_p3 }
 0x419   :  { %2355 = shalt.err (!%p2352_p5)
}
 0x41a   :  { %1694 = dma.vmem_to_hbm [thread:$0]  %s1692_s6, 64, %s2572_s9, [#allocation4]  }
 0x41b   :  { %2362 = dma.done.wait [#allocation4], 64  }
 0x41c   :  { %2363 = vsyncadd [#allocation4], 4294967232 }
 0x41d   :  { %1698 = vsyncpa [#allocation3], 1 }
 0x41e   :  { %1699 = vsyncpa [#allocation6], 1 }
 0x41f   :  { %1700 = vsyncpa [#allocation9], 1 }
 0x420   :  { %1701 = vsyncpa [#allocation4], 1 }

</bundles_post_ra>
